<compile_context>
chip_gen: v5e
topology: v5e:2x2
jax: 0.10.0
libtpu: 0.0.40
codegen_flags: <defaults>
</compile_context>

<pallas_src>
import jax
import jax.numpy as jnp
from jax.experimental import pallas as pl
from jax.experimental.pallas import tpu as pltpu


def _round_up(n, m):
    return ((n + m - 1) // m) * m


def _pad2d(a, rows, cols):
    return jnp.pad(a, ((0, rows - a.shape[0]), (0, cols - a.shape[1])))


def mlp_kernel(x_ref, w1_ref, b1_ref, w2_ref, b2_ref, w3_ref, b3_ref, o_ref):
    """Fused 3-layer MLP on one (TILE_B, state_size) batch tile.

    All matmuls accumulate in f32 on the MXU; bias add + ReLU stay in f32 on the
    VPU (valid on v5e, which has no bf16 VPU path).  The h1/h2 intermediates are
    compiler-materialized VMEM temporaries (tb x 128 / tb x 32 f32), not vregs.
    """
    cdt = w1_ref.dtype  # compute dtype of the MXU operands (f32 or bf16)

    x = x_ref[...]

    # Layer 1: (TB, S) @ (S, 128) + (1, 128) -> ReLU
    h1 = jnp.dot(x, w1_ref[...], preferred_element_type=jnp.float32) + b1_ref[...]
    h1 = jnp.maximum(h1, 0.0)

    # Layer 2: (TB, 128) @ (128, 32) + (1, 32) -> ReLU
    h2 = jnp.dot(h1.astype(cdt), w2_ref[...], preferred_element_type=jnp.float32) + b2_ref[...]
    h2 = jnp.maximum(h2, 0.0)

    # Layer 3 (logits): (TB, 32) @ (32, N) + (1, N)
    o_ref[...] = (
        jnp.dot(h2.astype(cdt), w3_ref[...], preferred_element_type=jnp.float32)
        + b3_ref[...]
    ).astype(o_ref.dtype)


def net_forward(obs, params, state=None, *, compute_dtype=jnp.float32, tile_b=1024):
    """Mirrors Net.forward: flatten to (batch, -1), run fused MLP, return (logits, state)."""
    obs = jnp.asarray(obs, dtype=jnp.float32)
    batch = obs.shape[0]
    x = obs.reshape(batch, -1)  # obs.view(batch, -1)
    state_size = x.shape[1]

    w1, b1, w2, b2, w3, b3 = params
    h1_dim = w1.shape[1]          # 128 (lane-aligned by construction)
    h2_dim = w2.shape[1]          # 32
    action_size = w3.shape[1]

    # Narrow output pad only (to a multiple of 8 lanes, min 8) -- NOT to 128.
    n_out = _round_up(max(action_size, 8), 8)

    # Batch tiling: pick tb to minimize padded-row waste, multiple of 8 (f32
    # sublane rule).  batch_pad is a whole number of tiles.
    n_tiles = pl.cdiv(batch, tile_b)
    tb = _round_up(pl.cdiv(batch, n_tiles), 8)
    batch_pad = tb * n_tiles
    grid = (n_tiles,)

    # Only the batch dim of x is padded (zero rows are sliced away below).
    xp = jnp.pad(x, ((0, batch_pad - batch), (0, 0))).astype(compute_dtype)
    w1c = w1.astype(compute_dtype)
    b1c = b1.astype(jnp.float32)
    w2c = w2.astype(compute_dtype)
    b2c = b2.astype(jnp.float32)
    # Padded w3/b3 columns are zero -> padded logits lanes are exactly 0.
    w3p = _pad2d(w3, h2_dim, n_out).astype(compute_dtype)
    b3p = _pad2d(b3, 1, n_out).astype(jnp.float32)

    def resident(shape):
        # Constant index_map -> block stays VMEM-resident across batch tiles.
        return pl.BlockSpec(shape, lambda i: (0, 0), memory_space=pltpu.VMEM)

    in_bytes = jnp.dtype(compute_dtype).itemsize
    w_elems = state_size * h1_dim + h1_dim * h2_dim + h2_dim * n_out
    cost = pl.CostEstimate(
        flops=2 * batch_pad * w_elems,
        transcendentals=0,
        bytes_accessed=(batch_pad * (state_size * in_bytes + n_out * 4)
                        + w_elems * in_bytes
                        + (h1_dim + h2_dim + n_out) * 4),
    )

    logits_pad = pl.pallas_call(
        mlp_kernel,
        out_shape=jax.ShapeDtypeStruct((batch_pad, n_out), jnp.float32),
        grid=grid,
        in_specs=[
            # x streamed at native feature width (last block dim == full array dim).
            pl.BlockSpec((tb, state_size), lambda i: (i, 0), memory_space=pltpu.VMEM),
            resident((state_size, h1_dim)),
            resident((1, h1_dim)),
            resident((h1_dim, h2_dim)),
            resident((1, h2_dim)),
            resident((h2_dim, n_out)),
            resident((1, n_out)),
        ],
        # Narrow (8-lane) output writeback instead of 128 f32 lanes per row.
        out_specs=pl.BlockSpec((tb, n_out), lambda i: (i, 0), memory_space=pltpu.VMEM),
        compiler_params=pltpu.CompilerParams(
            # v7x: shards batch tiles over 2 TCs; near no-op on v5e/v6e.
            # (pltpu.CORE_PARALLEL is the stronger v7x-specific knob if desired.)
            dimension_semantics=("parallel",)),
        cost_estimate=cost,
    )(xp, w1c, b1c, w2c, b2c, w3p, b3p)

    return logits_pad[:batch, :action_size], state


def init_params(key, state_size, action_size):
    """Deterministic synthetic init (PyTorch-Linear-style uniform fan-in bound).
    Weights are (in_features, out_features), i.e. transposed vs. torch.nn.Linear."""
    def linear(k, fan_in, fan_out):
        kw, kb = jax.random.split(k)
        bound = 1.0 / jnp.sqrt(jnp.float32(fan_in))
        w = jax.random.uniform(kw, (fan_in, fan_out), jnp.float32, -bound, bound)
        b = jax.random.uniform(kb, (1, fan_out), jnp.float32, -bound, bound)
        return w, b

    k1, k2, k3 = jax.random.split(key, 3)
    w1, b1 = linear(k1, state_size, 128)
    w2, b2 = linear(k2, 128, 32)
    w3, b3 = linear(k3, 32, action_size)
    return (w1, b1, w2, b2, w3, b3)


def _reference(obs, params):
    w1, b1, w2, b2, w3, b3 = params
    x = obs.reshape(obs.shape[0], -1)
    h = jnp.maximum(x @ w1 + b1, 0.0)
    h = jnp.maximum(h @ w2 + b2, 0.0)
    return h @ w3 + b3


if __name__ == "__main__":
    state_size = 16
    action_size = 4

    key = jax.random.PRNGKey(0)
    k_params, k_obs_small, k_obs_big = jax.random.split(key, 3)
    params = init_params(k_params, state_size, action_size)

    # Small batch (typical RL single-step call): single tile, grid=(1,).
    obs_small = jax.random.normal(k_obs_small, (8, state_size), dtype=jnp.float32)
    logits_s, _ = net_forward(obs_small, params, state=None)
    logits_s = jax.block_until_ready(logits_s)
    ref_s = _reference(obs_small, params)
    assert logits_s.shape == (8, action_size)
    assert jnp.allclose(logits_s, ref_s, atol=1e-5, rtol=1e-5)

    # Larger, non-tile-aligned batch with a small tile_b to exercise the batch
    # grid (4 x 256-row tiles, ragged tail handled by row padding) and the
    # double-buffered streaming of the narrow x / logits tiles.
    obs_big = jax.random.normal(k_obs_big, (1000, state_size), dtype=jnp.float32)
    logits_b, _ = net_forward(obs_big, params, state=None, tile_b=256)
    logits_b = jax.block_until_ready(logits_b)
    ref_b = _reference(obs_big, params)
    assert logits_b.shape == (1000, action_size)
    assert jnp.allclose(logits_b, ref_b, atol=1e-5, rtol=1e-5)

    # bf16 MXU-operand path (recommended default on v6e/v7x): f32 accumulation,
    # loosened tolerance since operands are rounded to bf16.
    logits_bf16, _ = net_forward(obs_big, params, state=None,
                                 compute_dtype=jnp.bfloat16, tile_b=256)
    logits_bf16 = jax.block_until_ready(logits_bf16)
    assert logits_bf16.shape == (1000, action_size)
    assert jnp.allclose(logits_bf16, ref_b, atol=5e-2, rtol=5e-2)

    print("KERNEL_OK")
</pallas_src>

<mosaic_0001>
module attributes {stable_mosaic.version = 11 : i64} {
  func.func @mlp_kernel(%arg0: i32, %arg1: memref<8x16xf32, #tpu.memory_space<vmem>>, %arg2: memref<16x128xf32, #tpu.memory_space<vmem>>, %arg3: memref<1x128xf32, #tpu.memory_space<vmem>>, %arg4: memref<128x32xf32, #tpu.memory_space<vmem>>, %arg5: memref<1x32xf32, #tpu.memory_space<vmem>>, %arg6: memref<32x8xf32, #tpu.memory_space<vmem>>, %arg7: memref<1x8xf32, #tpu.memory_space<vmem>>, %arg8: memref<8x8xf32, #tpu.memory_space<vmem>>) attributes {dimension_semantics = [#tpu.dimension_semantics<parallel>], iteration_bounds = array<i64: 1>, scalar_prefetch = 0 : i64, scratch_operands = 0 : i64, tpu.core_type = #tpu.core_type<tc>, window_params = [{transform_indices = @transform_0, window_bounds = array<i64: 8, 16>}, {pipeline_mode = #tpu.pipeline_mode<synchronous>, transform_indices = @transform_1, window_bounds = array<i64: 16, 128>}, {pipeline_mode = #tpu.pipeline_mode<synchronous>, transform_indices = @transform_2, window_bounds = array<i64: 1, 128>}, {pipeline_mode = #tpu.pipeline_mode<synchronous>, transform_indices = @transform_3, window_bounds = array<i64: 128, 32>}, {pipeline_mode = #tpu.pipeline_mode<synchronous>, transform_indices = @transform_4, window_bounds = array<i64: 1, 32>}, {pipeline_mode = #tpu.pipeline_mode<synchronous>, transform_indices = @transform_5, window_bounds = array<i64: 32, 8>}, {pipeline_mode = #tpu.pipeline_mode<synchronous>, transform_indices = @transform_6, window_bounds = array<i64: 1, 8>}, {transform_indices = @transform_7, window_bounds = array<i64: 8, 8>}]} {
    %c0 = arith.constant 0 : index
    %c0_0 = arith.constant 0 : index
    %0 = vector.load %arg1[%c0, %c0_0] : memref<8x16xf32, #tpu.memory_space<vmem>>, vector<8x16xf32>
    %c0_1 = arith.constant 0 : index
    %c0_2 = arith.constant 0 : index
    %1 = vector.load %arg2[%c0_1, %c0_2] : memref<16x128xf32, #tpu.memory_space<vmem>>, vector<16x128xf32>
    %cst = arith.constant dense<0.000000e+00> : vector<8x128xf32>
    %2 = tpu.matmul %0, %1, %cst {dimension_numbers = #tpu.dot_dimension_numbers<[1], [0], [0], [1], [0, 0, 1, 1], [], []>} : vector<8x16xf32>, vector<16x128xf32>, vector<8x128xf32> -> vector<8x128xf32>
    %c0_3 = arith.constant 0 : index
    %c0_4 = arith.constant 0 : index
    %3 = vector.load %arg3[%c0_3, %c0_4] : memref<1x128xf32, #tpu.memory_space<vmem>>, vector<1x128xf32>
    %4 = vector.broadcast %3 : vector<1x128xf32> to vector<8x128xf32>
    %5 = arith.addf %2, %4 : vector<8x128xf32>
    %cst_5 = arith.constant 0.000000e+00 : f32
    %6 = vector.broadcast %cst_5 : f32 to vector<8x128xf32>
    %7 = arith.maximumf %5, %6 : vector<8x128xf32>
    %c0_6 = arith.constant 0 : index
    %c0_7 = arith.constant 0 : index
    %8 = vector.load %arg4[%c0_6, %c0_7] : memref<128x32xf32, #tpu.memory_space<vmem>>, vector<128x32xf32>
    %cst_8 = arith.constant dense<0.000000e+00> : vector<8x32xf32>
    %9 = tpu.matmul %7, %8, %cst_8 {dimension_numbers = #tpu.dot_dimension_numbers<[1], [0], [0], [1], [0, 0, 1, 1], [], []>} : vector<8x128xf32>, vector<128x32xf32>, vector<8x32xf32> -> vector<8x32xf32>
    %c0_9 = arith.constant 0 : index
    %c0_10 = arith.constant 0 : index
    %10 = vector.load %arg5[%c0_9, %c0_10] : memref<1x32xf32, #tpu.memory_space<vmem>>, vector<1x32xf32>
    %11 = vector.broadcast %10 : vector<1x32xf32> to vector<8x32xf32>
    %12 = arith.addf %9, %11 : vector<8x32xf32>
    %cst_11 = arith.constant 0.000000e+00 : f32
    %13 = vector.broadcast %cst_11 : f32 to vector<8x32xf32>
    %14 = arith.maximumf %12, %13 : vector<8x32xf32>
    %c0_12 = arith.constant 0 : index
    %c0_13 = arith.constant 0 : index
    %15 = vector.load %arg6[%c0_12, %c0_13] : memref<32x8xf32, #tpu.memory_space<vmem>>, vector<32x8xf32>
    %cst_14 = arith.constant dense<0.000000e+00> : vector<8x8xf32>
    %16 = tpu.matmul %14, %15, %cst_14 {dimension_numbers = #tpu.dot_dimension_numbers<[1], [0], [0], [1], [0, 0, 1, 1], [], []>} : vector<8x32xf32>, vector<32x8xf32>, vector<8x8xf32> -> vector<8x8xf32>
    %c0_15 = arith.constant 0 : index
    %c0_16 = arith.constant 0 : index
    %17 = vector.load %arg7[%c0_15, %c0_16] : memref<1x8xf32, #tpu.memory_space<vmem>>, vector<1x8xf32>
    %18 = vector.broadcast %17 : vector<1x8xf32> to vector<8x8xf32>
    %19 = arith.addf %16, %18 : vector<8x8xf32>
    %c0_17 = arith.constant 0 : index
    %c0_18 = arith.constant 0 : index
    %20 = vector.load %arg8[%c0_17, %c0_18] : memref<8x8xf32, #tpu.memory_space<vmem>>, vector<8x8xf32>
    tpu.vector_store %arg8[%c0_17, %c0_18], %19 {strides = array<i32>} : memref<8x8xf32, #tpu.memory_space<vmem>>, vector<8x8xf32>,
    return
  }
  func.func @transform_0(%arg0: i32) -> (i32, i32) {
    %c0_i32 = arith.constant 0 : i32
    %c0_i32_0 = arith.constant 0 : i32
    return %arg0, %c0_i32 : i32, i32
  }
  func.func @transform_1(%arg0: i32) -> (i32, i32) {
    %c0_i32 = arith.constant 0 : i32
    %c0_i32_0 = arith.constant 0 : i32
    %c0_i32_1 = arith.constant 0 : i32
    return %c0_i32, %c0_i32_0 : i32, i32
  }
  func.func @transform_2(%arg0: i32) -> (i32, i32) {
    %c0_i32 = arith.constant 0 : i32
    %c0_i32_0 = arith.constant 0 : i32
    %c0_i32_1 = arith.constant 0 : i32
    return %c0_i32, %c0_i32_0 : i32, i32
  }
  func.func @transform_3(%arg0: i32) -> (i32, i32) {
    %c0_i32 = arith.constant 0 : i32
    %c0_i32_0 = arith.constant 0 : i32
    %c0_i32_1 = arith.constant 0 : i32
    return %c0_i32, %c0_i32_0 : i32, i32
  }
  func.func @transform_4(%arg0: i32) -> (i32, i32) {
    %c0_i32 = arith.constant 0 : i32
    %c0_i32_0 = arith.constant 0 : i32
    %c0_i32_1 = arith.constant 0 : i32
    return %c0_i32, %c0_i32_0 : i32, i32
  }
  func.func @transform_5(%arg0: i32) -> (i32, i32) {
    %c0_i32 = arith.constant 0 : i32
    %c0_i32_0 = arith.constant 0 : i32
    %c0_i32_1 = arith.constant 0 : i32
    return %c0_i32, %c0_i32_0 : i32, i32
  }
  func.func @transform_6(%arg0: i32) -> (i32, i32) {
    %c0_i32 = arith.constant 0 : i32
    %c0_i32_0 = arith.constant 0 : i32
    %c0_i32_1 = arith.constant 0 : i32
    return %c0_i32, %c0_i32_0 : i32, i32
  }
  func.func @transform_7(%arg0: i32) -> (i32, i32) {
    %c0_i32 = arith.constant 0 : i32
    %c0_i32_0 = arith.constant 0 : i32
    return %arg0, %c0_i32 : i32, i32
  }
}

</mosaic_0001>

<bundles_post_ra>
// kernel: tpu_custom_call.1
= control target key start
LH: loop header
LB: loop body
LE: loop exit
PB: predicated region body
PF: predicated region fallthrough
CT: control target
= control target key end

     0   :  { %vm34_vm0 = vcmask 130048   ;;  %s304_s0 = inlined_call_operand.vmem [shape: f32[8,16], index: 0, kind: input, shape index: {}]   ;;  %s305_s1 = inlined_call_operand.vmem [shape: f32[16,128], index: 1, kind: input, shape index: {}]   ;;  %s306_s2 = inlined_call_operand.vmem [shape: f32[1,128], index: 2, kind: input, shape index: {}]   ;;  %s307_s3 = inlined_call_operand.vmem [shape: f32[128,32], index: 3, kind: input, shape index: {}]   ;;  %s308_s4 = inlined_call_operand.vmem [shape: f32[1,32], index: 4, kind: input, shape index: {}]   ;;  %s309_s5 = inlined_call_operand.vmem [shape: f32[32,8], index: 5, kind: input, shape index: {}]   ;;  %s310_s6 = inlined_call_operand.vmem [shape: f32[1,8], index: 6, kind: input, shape index: {}]   ;;  %s311_s7 = inlined_call_operand.hbm [shape: f32[8,8], index: 7, kind: output, shape index: {}]  }
   0x1   :  { %v29_v0 = vld [vmem:[%s305_s1 + $0x8] sm:$0xff]  ;;  %v28_v1 = vld [vmem:[%s305_s1] sm:$0xff]  ;;  %v74_v3 = vld [vmem:[%s307_s3 + $0x78] sm:$0xff] }
   0x2   :  { %52 = vmatpush.msra.mxu0 %v29_v0  ;;  %v27_v2 = vld [vmem:[%s304_s0] sm:$0xff]  ;;  %v73_v4 = vld [vmem:[%s307_s3 + $0x70] sm:$0xff]  ;;  %79 = vmatpush.msra.mxu1 %v74_v3  ;;  %v72_v5 = vld [vmem:[%s307_s3 + $0x68] sm:$0xff] }
   0x3   :  { %v71_v6 = vld [vmem:[%s307_s3 + $0x60] sm:$0xff] }
   0x4   :  { %53 = vmatpush.msra.mxu0 %v28_v1  ;;  %80 = vmatpush.msra.mxu1 %v73_v4 }
   0x5   :  { %150 = vmatmul.msk.f32.vlgmr.msra.gmra.mxu0 %vm34_vm0, %v27_v2 }
   0x6   :  { %81 = vmatpush.msra.mxu1 %v72_v5 }
   0x7   :  { %12 = vsyncpa [#allocation3], 0  ;;  %v70_v7 = vld [vmem:[%s307_s3 + $0x58] sm:$0xff]  ;;  %v69_v8 = vld [vmem:[%s307_s3 + $0x50] sm:$0xff]  ;;  %vm108_vm1 = vcmask 261120   ;;  %s182_s24 = smov [#allocation2]  }
   0x8   :  { %82 = vmatpush.msra.mxu1 %v71_v6  ;;  %v68_v9 = vld [vmem:[%s307_s3 + $0x48] sm:$0xff]  ;;  %v67_v10 = vld [vmem:[%s307_s3 + $0x40] sm:$0xff]  ;;  %v66_v11 = vld [vmem:[%s307_s3 + $0x38] sm:$0xff]  ;;  %s139_s25 = sshll.u32 %s182_s24, 4  ;;  %vm132_vm2 = vcmask 64512   ;;  %s140_s25 = int_to_ptr.vmem [resolvable:$true] %s139_s25 }
   0x9   :  { %v65_v12 = vld [vmem:[%s307_s3 + $0x30] sm:$0xff]  ;;  %v64_v13 = vld [vmem:[%s307_s3 + $0x28] sm:$0xff]  ;;  %v63_v14 = vld [vmem:[%s307_s3 + $0x20] sm:$0xff] }
   0xa   :  { %83 = vmatpush.msra.mxu1 %v70_v7  ;;  %v62_v15 = vld [vmem:[%s307_s3 + $0x18] sm:$0xff]  ;;  %v61_v16 = vld [vmem:[%s307_s3 + $0x10] sm:$0xff]  ;;  %v60_v17 = vld [vmem:[%s307_s3 + $0x8] sm:$0xff] }
   0xb   :  { %v59_v18 = vld [vmem:[%s307_s3] sm:$0xff]  ;;  %v103_v19 = vld [vmem:[%s309_s5 + $0x18] sm:$0xff]  ;;  %v102_v24 = vld [vmem:[%s309_s5 + $0x10] sm:$0xff] }
   0xc   :  { %84 = vmatpush.msra.mxu1 %v69_v8  ;;  %124 = vmatpush.msra.mxu2 %v103_v19  ;;  %v153_v20 = vld [vmem:[%s306_s2] ss:$0 sm:$0xff]  ;;  %v101_v25 = vld [vmem:[%s309_s5 + $0x8] sm:$0xff] }
   0xd   :  { %v100_v26 = vld [vmem:[%s309_s5] sm:$0xff]  ;;  %s141_s5 = sshll.u32 %s311_s7, 4  ;;  %s142_s5 = int_to_ptr.hbm [resolvable:$true] %s141_s5 }
   0xe   :  { %85 = vmatpush.msra.mxu1 %v68_v9  ;;  %125 = vmatpush.msra.mxu2 %v102_v24  ;;  %v154_v27 = vld [vmem:[%s308_s4] ss:$0 sm:$0xff] }
   0xf   :  { %v155_v31 = vld [vmem:[%s310_s6] ss:$0 sm:$0xff] }
  0x10   :  { %86 = vmatpush.msra.mxu1 %v67_v10  ;;  %126 = vmatpush.msra.mxu2 %v101_v25 }
  0x12   :  { %87 = vmatpush.msra.mxu1 %v66_v11  ;;  %127 = vmatpush.msra.mxu2 %v100_v26 }
  0x14   :  { %88 = vmatpush.msra.mxu1 %v65_v12 }
  0x16   :  { %89 = vmatpush.msra.mxu1 %v64_v13 }
  0x18   :  { %90 = vmatpush.msra.mxu1 %v63_v14 }
  0x1a   :  { %91 = vmatpush.msra.mxu1 %v62_v15 }
  0x1c   :  { %92 = vmatpush.msra.mxu1 %v61_v16 }
  0x1e   :  { %93 = vmatpush.msra.mxu1 %v60_v17 }
  0x20   :  { %94 = vmatpush.msra.mxu1 %v59_v18 }
  0x82   :  { %v55_v21 = vpop.f32.mrf.mxu0 }
  0x83   :  { %v56_v22 = vadd.f32 %v153_v20, %v55_v21 }
  0x85   :  { %v58_v23 = vmax.f32 %v56_v22, 0.0 }
  0x87   :  { %95 = vmatmul.f32.vlgmr.msra.gmra.mxu1 %v58_v23 }
 0x104   :  { %v96_v28 = vpop.f32.mrf.mxu1 }
 0x105   :  { %v97_v29 = vadd.f32 %v154_v27, %v96_v28 }
 0x107   :  { %v99_v30 = vmax.f32 %v97_v29, 0.0 }
 0x109   :  { %151 = vmatmul.msk.f32.vlgmr.msra.gmra.mxu2 %vm108_vm1, %v99_v30 }
 0x18c   :  { %v129_v32 = vpop.f32.mrf.mxu2 }
 0x18d   :  { %v130_v33 = vadd.f32 %v155_v31, %v129_v32 }
 0x18f   :  { %133 = vst.msk [vmem:[#allocation2] sm:$0xff] %vm132_vm2, %v130_v33 }
 0x190   :  { %144 = dma.vmem_to_hbm [thread:$0]  %s140_s25, 128, %s142_s5, [#allocation3]  }
 0x191   :  { %180 = dma.done.wait [#allocation3], 128  }
 0x192   :  { %181 = vsyncadd [#allocation3], 4294967168 }
 0x193   :  { %149 = vsyncpa [#allocation3], 1 }

</bundles_post_ra>
